<compile_context>
chip_gen: v7x
topology: tpu7x:2x2x1
jax: 0.10.0
libtpu: 0.0.40
codegen_flags: <defaults>
</compile_context>

<pallas_src>
import jax
import jax.numpy as jnp
from jax import lax
from jax.experimental import pallas as pl
from jax.experimental.pallas import tpu as pltpu


def _decoder_fused_kernel(toks_ref, h0_ref, enc_ref,
                          w_attn_ref, w_ih_tok_ref, w_ih_att_ref, w_hh_ref,
                          b_rnn_ref, w_out_ref, b_out_ref,
                          packed_ref, h_out_ref):
    """All T decode steps in one kernel invocation (grid=(), everything resident)."""
    n_steps, batch, n_out = toks_ref.shape
    seq = enc_ref.shape[1]
    pack = packed_ref.shape[2]

    enc = enc_ref[...]            # (B, S, E) — resident, loaded once
    w_attn = w_attn_ref[...]      # (H, E)
    w_tok = w_ih_tok_ref[...]     # (O, H)
    w_att = w_ih_att_ref[...]     # (E, H)
    w_hh = w_hh_ref[...]          # (H, H)
    b_rnn = b_rnn_ref[...]        # (1, H)   folded b_ih + b_hh
    w_out = w_out_ref[...]        # (H, O)
    b_out = b_out_ref[...]        # (1, O)

    pad_width = pack - n_out - seq
    pad = jnp.zeros((batch, pad_width), jnp.float32) if pad_width > 0 else None

    def step(t, h):
        tok = toks_ref[t]                                                  # (B, O)

        # ---- attention (assumed Luong "general"). Tiny B/S/E -> batched
        # contractions on VPU (+ XLU reduce) instead of M=1 MXU passes.
        q = jnp.dot(h, w_attn, preferred_element_type=jnp.float32)        # (B, E)
        scores = jnp.sum(enc * q[:, None, :], axis=-1)                    # (B, S)
        scores = scores - jnp.max(scores, axis=-1, keepdims=True)
        e = jnp.exp(scores)
        # Exact reciprocal kept on purpose: approx (~2^-12 rel err) would eat
        # into the 1e-4 parity tolerance below; use approx=True in production.
        attn = e * pl.reciprocal(jnp.sum(e, axis=-1, keepdims=True), approx=False)
        attended = jnp.sum(attn[:, :, None] * enc, axis=1)                 # (B, E)

        # ---- RNN cell (nn.RNN, tanh). Token part (K = O = 2) on the VPU.
        tok_part = tok[:, 0:1] * w_tok[0:1, :]
        for i in range(1, n_out):
            tok_part = tok_part + tok[:, i:i + 1] * w_tok[i:i + 1, :]
        h_new = jnp.tanh(
            tok_part
            + jnp.dot(attended, w_att, preferred_element_type=jnp.float32)
            + jnp.dot(h, w_hh, preferred_element_type=jnp.float32)
            + b_rnn)                                                        # (B, H)

        # ---- output linear
        out = jnp.dot(h_new, w_out, preferred_element_type=jnp.float32) + b_out

        # ---- single full-width lane-dense store; padding lanes zero-filled.
        parts = [out, attn] + ([pad] if pad is not None else [])
        packed_ref[t] = jnp.concatenate(parts, axis=-1)                     # (B, PACK)
        return h_new

    h_final = lax.fori_loop(0, n_steps, step, h0_ref[...], unroll=True)
    h_out_ref[...] = h_final


def decode_fused(toks, hidden, encoder_outputs, prepared):
    """Run T decoder steps (teacher-forced tokens) in ONE pallas_call.

    toks: (T, B, O), hidden: (1, B, H), encoder_outputs: (S, B, E).
    Returns (outputs (T,B,O), final_hidden (B,H), attn_maps (T,B,S)).
    """
    T, B, O = toks.shape
    _, _, H = hidden.shape
    S, _, E = encoder_outputs.shape
    PACK = 128 * pl.cdiv(O + S, 128)          # lane-dense packed output width

    toks = toks.astype(jnp.float32)
    h0 = hidden[0].astype(jnp.float32)                                      # (B, H)
    # One batch-major transpose per fused call.  For real sizes the encoder
    # should emit batch-major directly (this is an extra HBM round-trip).
    enc = jnp.transpose(encoder_outputs, (1, 0, 2)).astype(jnp.float32)     # (B, S, E)

    vmem = pl.BlockSpec(memory_space=pltpu.MemorySpace.VMEM)  # whole array, resident
    p = prepared

    packed, h_final = pl.pallas_call(
        _decoder_fused_kernel,
        out_shape=(
            jax.ShapeDtypeStruct((T, B, PACK), jnp.float32),
            jax.ShapeDtypeStruct((B, H), jnp.float32),
        ),
        in_specs=[vmem] * 10,
        out_specs=(vmem, vmem),
        # grid=() — single invocation; set vmem_limit_bytes / chunk T / tile enc
        # over S once residency grows beyond the scoped VMEM default.
    )(toks, h0, enc,
      p["w_attn"], p["w_ih_tok"], p["w_ih_att"], p["w_hh"],
      p["b_rnn"], p["w_out"], p["b_out"])

    outputs = packed[:, :, :O]
    attn_maps = packed[:, :, O:O + S]
    return outputs, h_final, attn_maps


def decoder_forward(input_tok, hidden, encoder_outputs, prepared):
    """Single-step forward matching Decoder.forward: (output, hidden, attn_map)."""
    outs, h_new, attns = decode_fused(input_tok[None, ...], hidden,
                                      encoder_outputs, prepared)
    return outs[0], h_new[None, ...], attns[0]


def init_params(key, hidden_size, enc_size, output_size=2):
    """PyTorch-layout parameters (nn.RNN / nn.Linear conventions)."""
    H, E, O = hidden_size, enc_size, output_size
    ks = jax.random.split(key, 7)
    scale = 0.1
    return {
        "w_attn": scale * jax.random.normal(ks[0], (H, E), jnp.float32),
        "w_ih":   scale * jax.random.normal(ks[1], (H, O + E), jnp.float32),  # weight_ih_l0
        "w_hh":   scale * jax.random.normal(ks[2], (H, H), jnp.float32),      # weight_hh_l0
        "b_ih":   scale * jax.random.normal(ks[3], (1, H), jnp.float32),
        "b_hh":   scale * jax.random.normal(ks[4], (1, H), jnp.float32),
        "w_out":  scale * jax.random.normal(ks[5], (O, H), jnp.float32),      # nn.Linear weight
        "b_out":  scale * jax.random.normal(ks[6], (1, O), jnp.float32),
    }


def prepare_params(p):
    """One-time host-side layout plumbing: (in,out) weights, split w_ih, fold biases."""
    O = p["w_out"].shape[0]
    return {
        "w_attn":   jnp.asarray(p["w_attn"], jnp.float32),            # (H, E)
        "w_ih_tok": jnp.asarray(p["w_ih"][:, :O].T, jnp.float32),     # (O, H)
        "w_ih_att": jnp.asarray(p["w_ih"][:, O:].T, jnp.float32),     # (E, H)
        "w_hh":     jnp.asarray(p["w_hh"].T, jnp.float32),            # (H, H)
        "b_rnn":    jnp.asarray(p["b_ih"] + p["b_hh"], jnp.float32),  # (1, H)
        "w_out":    jnp.asarray(p["w_out"].T, jnp.float32),           # (H, O)
        "b_out":    jnp.asarray(p["b_out"], jnp.float32),             # (1, O)
    }


def reference_forward(input_tok, hidden, encoder_outputs, p):
    """Pure-JAX reference (same math as the PyTorch Decoder with assumed attention)."""
    h = hidden[0]
    enc = jnp.transpose(encoder_outputs, (1, 0, 2))
    q = h @ p["w_attn"]
    scores = jnp.sum(enc * q[:, None, :], axis=-1)
    attn = jax.nn.softmax(scores, axis=-1)
    attended = jnp.sum(attn[:, :, None] * enc, axis=1)
    rnn_in = jnp.concatenate([input_tok, attended], axis=1)
    h_new = jnp.tanh(rnn_in @ p["w_ih"].T + p["b_ih"] + h @ p["w_hh"].T + p["b_hh"])
    out = h_new @ p["w_out"].T + p["b_out"]
    return out, h_new[None], attn


if __name__ == "__main__":
    B, S, E, H, O, T = 2, 8, 16, 32, 2, 4

    key = jax.random.PRNGKey(0)
    k_tok, k_hid, k_enc, k_par, k_seq = jax.random.split(key, 5)

    input_tok = jax.random.normal(k_tok, (B, O), jnp.float32)
    hidden = jax.random.normal(k_hid, (1, B, H), jnp.float32)
    encoder_outputs = jax.random.normal(k_enc, (S, B, E), jnp.float32)
    params = init_params(k_par, H, E, O)
    prepared = prepare_params(params)

    # ---- single step (exact Decoder.forward semantics) --------------------
    output, hidden_new, attn_map = decoder_forward(
        input_tok, hidden, encoder_outputs, prepared)
    jax.block_until_ready((output, hidden_new, attn_map))

    ref_out, ref_h, ref_attn = reference_forward(
        input_tok, hidden, encoder_outputs, params)

    assert output.shape == (B, O)
    assert hidden_new.shape == (1, B, H)
    assert attn_map.shape == (B, S)
    assert jnp.allclose(output, ref_out, atol=1e-4, rtol=1e-4)
    assert jnp.allclose(hidden_new, ref_h, atol=1e-4, rtol=1e-4)
    assert jnp.allclose(attn_map, ref_attn, atol=1e-4, rtol=1e-4)

    # ---- fused T-step decode (teacher-forced tokens), one pallas_call -----
    toks = jax.random.normal(k_seq, (T, B, O), jnp.float32)
    outs, h_T, attns = decode_fused(toks, hidden, encoder_outputs, prepared)
    jax.block_until_ready((outs, h_T, attns))

    ref_hT = hidden
    ref_outs, ref_attns = [], []
    for t in range(T):
        o_t, ref_hT, a_t = reference_forward(toks[t], ref_hT, encoder_outputs, params)
        ref_outs.append(o_t)
        ref_attns.append(a_t)
    ref_outs = jnp.stack(ref_outs)
    ref_attns = jnp.stack(ref_attns)

    assert outs.shape == (T, B, O) and attns.shape == (T, B, S) and h_T.shape == (B, H)
    assert jnp.allclose(outs, ref_outs, atol=1e-4, rtol=1e-4)
    assert jnp.allclose(h_T, ref_hT[0], atol=1e-4, rtol=1e-4)
    assert jnp.allclose(attns, ref_attns, atol=1e-4, rtol=1e-4)

    print("KERNEL_OK")
</pallas_src>

<mosaic_0001>
module attributes {stable_mosaic.version = 11 : i64} {
  func.func @_decoder_fused_kernel(%arg0: memref<1x2x2xf32, #tpu.memory_space<vmem>>, %arg1: memref<2x32xf32, #tpu.memory_space<vmem>>, %arg2: memref<2x8x16xf32, #tpu.memory_space<vmem>>, %arg3: memref<32x16xf32, #tpu.memory_space<vmem>>, %arg4: memref<2x32xf32, #tpu.memory_space<vmem>>, %arg5: memref<16x32xf32, #tpu.memory_space<vmem>>, %arg6: memref<32x32xf32, #tpu.memory_space<vmem>>, %arg7: memref<1x32xf32, #tpu.memory_space<vmem>>, %arg8: memref<32x2xf32, #tpu.memory_space<vmem>>, %arg9: memref<1x2xf32, #tpu.memory_space<vmem>>, %arg10: memref<1x2x128xf32, #tpu.memory_space<vmem>>, %arg11: memref<2x32xf32, #tpu.memory_space<vmem>>) attributes {dimension_semantics = [], scalar_prefetch = 0 : i64, scratch_operands = 0 : i64, tpu.core_type = #tpu.core_type<tc>} {
    %c0 = arith.constant 0 : index
    %c0_0 = arith.constant 0 : index
    %c0_1 = arith.constant 0 : index
    %0 = vector.load %arg2[%c0, %c0_0, %c0_1] : memref<2x8x16xf32, #tpu.memory_space<vmem>>, vector<2x8x16xf32>
    %c0_2 = arith.constant 0 : index
    %c0_3 = arith.constant 0 : index
    %1 = vector.load %arg3[%c0_2, %c0_3] : memref<32x16xf32, #tpu.memory_space<vmem>>, vector<32x16xf32>
    %c0_4 = arith.constant 0 : index
    %c0_5 = arith.constant 0 : index
    %2 = vector.load %arg4[%c0_4, %c0_5] : memref<2x32xf32, #tpu.memory_space<vmem>>, vector<2x32xf32>
    %c0_6 = arith.constant 0 : index
    %c0_7 = arith.constant 0 : index
    %3 = vector.load %arg5[%c0_6, %c0_7] : memref<16x32xf32, #tpu.memory_space<vmem>>, vector<16x32xf32>
    %c0_8 = arith.constant 0 : index
    %c0_9 = arith.constant 0 : index
    %4 = vector.load %arg6[%c0_8, %c0_9] : memref<32x32xf32, #tpu.memory_space<vmem>>, vector<32x32xf32>
    %c0_10 = arith.constant 0 : index
    %c0_11 = arith.constant 0 : index
    %5 = vector.load %arg7[%c0_10, %c0_11] : memref<1x32xf32, #tpu.memory_space<vmem>>, vector<1x32xf32>
    %c0_12 = arith.constant 0 : index
    %c0_13 = arith.constant 0 : index
    %6 = vector.load %arg8[%c0_12, %c0_13] : memref<32x2xf32, #tpu.memory_space<vmem>>, vector<32x2xf32>
    %c0_14 = arith.constant 0 : index
    %c0_15 = arith.constant 0 : index
    %7 = vector.load %arg9[%c0_14, %c0_15] : memref<1x2xf32, #tpu.memory_space<vmem>>, vector<1x2xf32>
    %cst = arith.constant 0.000000e+00 : f32
    %8 = vector.broadcast %cst : f32 to vector<2x118xf32>
    %c0_16 = arith.constant 0 : index
    %c0_17 = arith.constant 0 : index
    %9 = vector.load %arg1[%c0_16, %c0_17] : memref<2x32xf32, #tpu.memory_space<vmem>>, vector<2x32xf32>
    %c0_i32 = arith.constant 0 : i32
    %10 = arith.index_cast %c0_i32 : i32 to index
    %c0_18 = arith.constant 0 : index
    %c0_19 = arith.constant 0 : index
    %11 = vector.load %arg0[%10, %c0_18, %c0_19] : memref<1x2x2xf32, #tpu.memory_space<vmem>>, vector<1x2x2xf32>
    %12 = vector.shape_cast %11 : vector<1x2x2xf32> to vector<2x2xf32>
    %cst_20 = arith.constant dense<0.000000e+00> : vector<2x16xf32>
    %13 = tpu.matmul %9, %1, %cst_20 {dimension_numbers = #tpu.dot_dimension_numbers<[1], [0], [0], [1], [0, 0, 1, 1], [], []>} : vector<2x32xf32>, vector<32x16xf32>, vector<2x16xf32> -> vector<2x16xf32>
    %14 = vector.shape_cast %13 : vector<2x16xf32> to vector<2x1x16xf32>
    %15 = vector.broadcast %14 : vector<2x1x16xf32> to vector<2x8x16xf32>
    %16 = arith.mulf %0, %15 : vector<2x8x16xf32>
    %cst_21 = arith.constant dense<0.000000e+00> : vector<2x8xf32>
    %17 = vector.multi_reduction <add>, %16, %cst_21 [2] : vector<2x8x16xf32> to vector<2x8xf32>
    %cst_22 = arith.constant dense<0xFF800000> : vector<2xf32>
    %18 = vector.multi_reduction <maximumf>, %17, %cst_22 [1] : vector<2x8xf32> to vector<2xf32>
    %19 = vector.shape_cast %18 : vector<2xf32> to vector<2x1xf32>
    %20 = vector.broadcast %19 : vector<2x1xf32> to vector<2x8xf32>
    %21 = arith.subf %17, %20 : vector<2x8xf32>
    %22 = math.exp %21 : vector<2x8xf32>
    %cst_23 = arith.constant dense<0.000000e+00> : vector<2xf32>
    %23 = vector.multi_reduction <add>, %22, %cst_23 [1] : vector<2x8xf32> to vector<2xf32>
    %24 = vector.shape_cast %23 : vector<2xf32> to vector<2x1xf32>
    %25 = tpu.reciprocal %24 : vector<2x1xf32> -> vector<2x1xf32>
    %26 = vector.broadcast %25 : vector<2x1xf32> to vector<2x8xf32>
    %27 = arith.mulf %22, %26 : vector<2x8xf32>
    %28 = vector.shape_cast %27 : vector<2x8xf32> to vector<2x8x1xf32>
    %29 = vector.broadcast %28 : vector<2x8x1xf32> to vector<2x8x16xf32>
    %30 = arith.mulf %29, %0 : vector<2x8x16xf32>
    %cst_24 = arith.constant dense<0.000000e+00> : vector<2x16xf32>
    %31 = vector.multi_reduction <add>, %30, %cst_24 [1] : vector<2x8x16xf32> to vector<2x16xf32>
    %32 = vector.extract_strided_slice %12 {offsets = [0, 0], sizes = [2, 1], strides = [1, 1]} : vector<2x2xf32> to vector<2x1xf32>
    %33 = vector.extract_strided_slice %2 {offsets = [0, 0], sizes = [1, 32], strides = [1, 1]} : vector<2x32xf32> to vector<1x32xf32>
    %34 = vector.broadcast %32 : vector<2x1xf32> to vector<2x32xf32>
    %35 = vector.broadcast %33 : vector<1x32xf32> to vector<2x32xf32>
    %36 = arith.mulf %34, %35 : vector<2x32xf32>
    %37 = vector.extract_strided_slice %12 {offsets = [0, 1], sizes = [2, 1], strides = [1, 1]} : vector<2x2xf32> to vector<2x1xf32>
    %38 = vector.extract_strided_slice %2 {offsets = [1, 0], sizes = [1, 32], strides = [1, 1]} : vector<2x32xf32> to vector<1x32xf32>
    %39 = vector.broadcast %37 : vector<2x1xf32> to vector<2x32xf32>
    %40 = vector.broadcast %38 : vector<1x32xf32> to vector<2x32xf32>
    %41 = arith.mulf %39, %40 : vector<2x32xf32>
    %42 = arith.addf %36, %41 : vector<2x32xf32>
    %cst_25 = arith.constant dense<0.000000e+00> : vector<2x32xf32>
    %43 = tpu.matmul %31, %3, %cst_25 {dimension_numbers = #tpu.dot_dimension_numbers<[1], [0], [0], [1], [0, 0, 1, 1], [], []>} : vector<2x16xf32>, vector<16x32xf32>, vector<2x32xf32> -> vector<2x32xf32>
    %44 = arith.addf %42, %43 : vector<2x32xf32>
    %cst_26 = arith.constant dense<0.000000e+00> : vector<2x32xf32>
    %45 = tpu.matmul %9, %4, %cst_26 {dimension_numbers = #tpu.dot_dimension_numbers<[1], [0], [0], [1], [0, 0, 1, 1], [], []>} : vector<2x32xf32>, vector<32x32xf32>, vector<2x32xf32> -> vector<2x32xf32>
    %46 = arith.addf %44, %45 : vector<2x32xf32>
    %47 = vector.broadcast %5 : vector<1x32xf32> to vector<2x32xf32>
    %48 = arith.addf %46, %47 : vector<2x32xf32>
    %49 = math.tanh %48 : vector<2x32xf32>
    %cst_27 = arith.constant dense<0.000000e+00> : vector<2x2xf32>
    %50 = tpu.matmul %49, %6, %cst_27 {dimension_numbers = #tpu.dot_dimension_numbers<[1], [0], [0], [1], [0, 0, 1, 1], [], []>} : vector<2x32xf32>, vector<32x2xf32>, vector<2x2xf32> -> vector<2x2xf32>
    %51 = vector.broadcast %7 : vector<1x2xf32> to vector<2x2xf32>
    %52 = arith.addf %50, %51 : vector<2x2xf32>
    %53 = tpu.concatenate %52, %27, %8 in 1 : vector<2x2xf32>, vector<2x8xf32>, vector<2x118xf32> -> vector<2x128xf32>
    %54 = arith.index_cast %c0_i32 : i32 to index
    %c0_28 = arith.constant 0 : index
    %c0_29 = arith.constant 0 : index
    %55 = vector.load %arg10[%54, %c0_28, %c0_29] : memref<1x2x128xf32, #tpu.memory_space<vmem>>, vector<1x2x128xf32>
    %56 = vector.shape_cast %55 : vector<1x2x128xf32> to vector<2x128xf32>
    %57 = vector.shape_cast %53 : vector<2x128xf32> to vector<1x2x128xf32>
    tpu.vector_store %arg10[%54, %c0_28, %c0_29], %57 {strides = array<i32>} : memref<1x2x128xf32, #tpu.memory_space<vmem>>, vector<1x2x128xf32>,
    %c1_i32 = arith.constant 1 : i32
    %c0_30 = arith.constant 0 : index
    %c0_31 = arith.constant 0 : index
    %58 = vector.load %arg11[%c0_30, %c0_31] : memref<2x32xf32, #tpu.memory_space<vmem>>, vector<2x32xf32>
    tpu.vector_store %arg11[%c0_30, %c0_31], %49 {strides = array<i32>} : memref<2x32xf32, #tpu.memory_space<vmem>>, vector<2x32xf32>,
    return
  }
}

</mosaic_0001>

<bundles_post_ra>
// kernel: tpu_custom_call.1
= control target key start
LH: loop header
LB: loop body
LE: loop exit
PB: predicated region body
PF: predicated region fallthrough
CT: control target
= control target key end

     0   :  { %17 = vsyncpa [#allocation3], 0  ;;  %v725_v3 = vmov 0.0|0.0   ;;  %vm726_vm0 = vmmov 0   ;;  %v727_v6 = vmov 0.0   ;;  %s943_s0 = inlined_call_operand.vmem [shape: f32[1,2,2], index: 0, kind: input, shape index: {}]   ;;  %s944_s1 = inlined_call_operand.vmem [shape: f32[2,32], index: 1, kind: input, shape index: {}]   ;;  %s945_s2 = inlined_call_operand.vmem [shape: f32[2,8,16], index: 2, kind: input, shape index: {}]   ;;  %s946_s3 = inlined_call_operand.vmem [shape: f32[32,16], index: 3, kind: input, shape index: {}]   ;;  %s947_s4 = inlined_call_operand.vmem [shape: f32[2,32], index: 4, kind: input, shape index: {}]   ;;  %s948_s5 = inlined_call_operand.vmem [shape: f32[16,32], index: 5, kind: input, shape index: {}]   ;;  %s949_s6 = inlined_call_operand.vmem [shape: f32[32,32], index: 6, kind: input, shape index: {}]   ;;  %s950_s7 = inlined_call_operand.vmem [shape: f32[1,32], index: 7, kind: input, shape index: {}]   ;;  %s951_s8 = inlined_call_operand.vmem [shape: f32[32,2], index: 8, kind: input, shape index: {}]   ;;  %s952_s9 = inlined_call_operand.vmem [shape: f32[1,2], index: 9, kind: input, shape index: {}]   ;;  %s953_s10 = inlined_call_operand.hbm [shape: f32[1,2,128], index: 10, kind: output, shape index: {0}]   ;;  %s954_s11 = inlined_call_operand.hbm [shape: f32[2,32], index: 11, kind: output, shape index: {1}]  }
   0x1   :  { %v41_v0 = vld [vmem:[%s946_s3] sm:$0xff]  ;;  %v42_v1 = vld [vmem:[%s946_s3 + $0x8] sm:$0xff]  ;;  %v43_v2 = vld [vmem:[%s946_s3 + $0x10] sm:$0xff]  ;;  %637 = vmatprep.subr.bf16.mxu0 %v725_v3  ;;  %605 = vmatprep.mubr.msk.f32.mxu0 %vm726_vm0, %v727_v6 }
   0x2   :  { %v638_v4 = vpack.c.bf16 %v42_v1, %v41_v0  ;;  %v44_v5 = vld [vmem:[%s946_s3 + $0x18] sm:$0xff] }
   0x3   :  { %18 = vsyncpa [#allocation5], 0  ;;  %643 = vmatprep.subr.bf16.mxu1 %v725_v3  ;;  %612 = vmatprep.mubr.msk.f32.mxu1 %vm726_vm0, %v727_v6  ;;  %v641_v7 = vpack.c.bf16 %v44_v5, %v43_v2  ;;  %v815_v8 = vld [vmem:[%s944_s1] sm:$0x3]  ;;  %vm60_vm1 = vcmask 261120   ;;  %v138_v11 = vlaneseq  ;;  %vm169_vm2 = vcmask 130048  }
   0x4   :  { %639 = vmatpush3.bf16.msra.mxu0 %v638_v4  ;;  %v728_v9 = vmov 1966171168   ;;  %v831_v21 = vld [vmem:[%s945_s2] sm:$0xff]  ;;  %v837_v24 = vld [vmem:[%s945_s2 + $0x8] sm:$0xff]  ;;  %vm188_vm3 = vcmask 1041409   ;;  %vm191_vm4 = vcmask 58368  }
   0x5   :  { %640 = vmatprep.subr.bf16.mxu0 %v725_v3  ;;  %v136_v10 = vunpack.c.l.s4 %v728_v9  ;;  %v822_v13 = vshrl.u32 %v138_v11, 7  ;;  %v179_v30 = vand.u32 127, %v138_v11  ;;  %v729_v38 = vmov 0   ;;  %v59_v55 = vld [vmem:[%s943_s0] sm:$0x3]  ;;  %v47_v0 = vld [vmem:[%s948_s5 + $0x8] sm:$0xff] }
   0x6   :  { %667 = vset.pattern.permute.xlu0 %v729_v38  ;;  %666 = vset.pattern.permute.xlu1 %v729_v38  ;;  %v730_v62 = vmov 1   ;;  %v46_v63 = vld [vmem:[%s948_s5] sm:$0xff]  ;;  %v55_v38 = vld [vmem:[%s951_s8 + $0x10] sm:$0xff]  ;;  %vm543_vm5 = vcmask 254976  }
   0x7   :  { %v137_v12 = vunpack.c.0.s8 %v136_v10  ;;  %v826_v18 = vsub.s32 0, %v822_v13  ;;  %v182_v32 = vsub.s32 %v179_v30, %v822_v13  ;;  %v848_v39 = vsub.s32 1, %v822_v13 }
   0x8   :  { %642 = vmatpush3.bf16.msra.mxu0 %v641_v7  ;;  %v644_v1 = vpack.c.bf16 %v47_v0, %v46_v63  ;;  %v527_v2 = vadd.s32 4294967294, %v179_v30 }
   0x9   :  { %652 = vmatprep.subr.bf16.mxu0 %v725_v3  ;;  %v140_v14 = vsub.s32 %v137_v12, %v822_v13 }
   0xa   :  { %645 = vmatpush3.bf16.msra.mxu1 %v644_v1  ;;  %v530_v5 = vsub.s32 %v527_v2, %v822_v13 }
   0xb   :  { %606 = vmatmul.mubr.msk.f32.vlgmr.msra.gmra.mrb[0].mxu0 %vm60_vm1, %v815_v8  ;;  %646 = vmatprep.subr.bf16.mxu1 %v725_v3 }
   0xc   :  { %634 = vmatprep.mubr.msk.f32.mxu0 %vm726_vm0, %v727_v6 }
  0xde   :  { %v130_v15 = vpop.f32.mrb[0].mxu0 }
  0xdf   :  { %v141_v16 = vrot.slane %v130_v15, %v140_v14  ;;  %v607_v17 = vpop.f32.mrb[1].mxu0 }
  0xe1   :  { %v142_v19 = vcombine.high %v141_v16, %v141_v16  ;;  %v149_v20 = vrot.slane %v141_v16, %v140_v14 }
  0xe3   :  { %v156_v22 = vrot.slane %v142_v19, %v140_v14  ;;  %v160_v23 = vrot.slane %v149_v20, %v826_v18 }
  0xe5   :  { %v167_v25 = vmul.f32 %v160_v23, %v831_v21  ;;  %v164_v26 = vrot.slane %v156_v22, %v826_v18 }
  0xe7   :  { %v170_v27 = vsel %vm169_vm2, %v167_v25, 0.0  ;;  %v168_v28 = vmul.f32 %v164_v26, %v837_v24 }
  0xe8   :  { %171 = vadd.xlane.f32.xlu0 %v170_v27  ;;  %v48_v27 = vld [vmem:[%s949_s6] sm:$0xff] }
  0xe9   :  { %v173_v29 = vsel %vm169_vm2, %v168_v28, 0.0 }
  0xec   :  { %174 = vadd.xlane.f32.xlu0 %v173_v29 }
 0x175   :  { %v172_v31 = vpop.xlane.xlu0 %171 }
 0x176   :  { %v183_v34 = vrot.slane %v172_v31, %v182_v32 }
 0x179   :  { %v175_v33 = vpop.xlane.xlu0 %174 }
 0x17a   :  { %v187_v35 = vrot.slane %v175_v33, %v182_v32 }
 0x17c   :  { %v189_v36 = vsel %vm188_vm3, %v187_v35, %v183_v34 }
 0x17d   :  { %v192_v37 = vsel %vm191_vm4, %v189_v36, -inf  ;;  %v53_v36 = vld [vmem:[%s951_s8] sm:$0xff] }
 0x17e   :  { %193 = vmax.xlane.f32.xlu1 %v192_v37  ;;  %v54_v37 = vld [vmem:[%s951_s8 + $0x8] sm:$0xff] }
 0x20b   :  { %v194_v40 = vpop.xlane.xlu1 %193 }
 0x20c   :  { %v199_v41 = vrot.slane %v194_v40, %v826_v18  ;;  %v203_v42 = vrot.slane %v194_v40, %v848_v39  ;;  %v653_v40 = vpack.c.bf16 %v54_v37, %v53_v36 }
 0x20e   :  { %v206_v43 = vsub.f32 %v172_v31, %v199_v41  ;;  %v207_v44 = vsub.f32 %v175_v33, %v203_v42  ;;  %v51_v33 = vld [vmem:[%s949_s6 + $0x18] sm:$0xff]  ;;  %654 = vmatpush3.bf16.msra.mxu0 %v653_v40 }
 0x20f   :  { %655 = vmatprep.subr.bf16.mxu0 %v725_v3 }
 0x210   :  { %v208_v45 = vmul.f32 1.442695, %v206_v43  ;;  %v210_v46 = vmul.f32 1.442695, %v207_v44 }
 0x212   :  { %669 = vpow2.f32 %v208_v45 }
 0x213   :  { %671 = vpow2.f32 %v210_v46 }
 0x21c   :  { %v670_v47 = vpop.eup %669 }
 0x21d   :  { %v672_v48 = vpop.eup %671  ;;  %215 = vperm.xlu1 %666, %v670_v47  }
 0x21e   :  { %218 = vperm.xlu0 %667, %v672_v48  }
 0x29c   :  { %v216_v49 = vpop.permute.xlu1 %215 }
 0x29d   :  { %v219_v50 = vpop.permute.xlu0 %218  ;;  %v223_v51 = vrot.slane %v216_v49, %v182_v32 }
 0x29e   :  { %v227_v52 = vrot.slane %v219_v50, %v182_v32  ;;  %v50_v32 = vld [vmem:[%s949_s6 + $0x10] sm:$0xff] }
 0x29f   :  { %v650_v35 = vpack.c.bf16 %v51_v33, %v50_v32 }
 0x2a0   :  { %v228_v53 = vsel %vm188_vm3, %v227_v52, %v223_v51 }
 0x2a1   :  { %v230_v54 = vsel %vm191_vm4, %v228_v53, 0.0 }
 0x2a2   :  { %231 = vadd.xlane.f32.xlu1 %v230_v54 }
 0x2b3   :  { %275 = vperm.xlu1 %666, %v59_v55  }
 0x32f   :  { %v232_v56 = vpop.xlane.xlu1 %231 }
 0x330   :  { %673 = vrcp.f32 %v232_v56 }
 0x333   :  { %v276_v45 = vpop.permute.xlu1 %275 }
 0x33a   :  { %v674_v57 = vpop.eup %673 }
 0x33b   :  { %v238_v58 = vrot.slane %v674_v57, %v826_v18  ;;  %v242_v60 = vrot.slane %v674_v57, %v848_v39 }
 0x33d   :  { %v245_v59 = vmul.f32 %v670_v47, %v238_v58  ;;  %v246_v61 = vmul.f32 %v672_v48, %v242_v60 }
 0x33f   :  { %249 = vperm.xlu0 %667, %v245_v59  }
 0x343   :  { %254 = vperm.xlu0 %667, %v246_v61  }
 0x347   :  { %668 = vset.pattern.permute.xlu0 %v730_v62 }
 0x348   :  { %284 = vperm.xlu0 %668, %v59_v55  }
 0x3be   :  { %v250_v4 = vpop.permute.xlu0 %249 }
 0x3bf   :  { %v257_v7 = vmul.f32 %v250_v4, %v831_v21  ;;  %v531_v12 = vrot.slane %v250_v4, %v530_v5 }
 0x3c1   :  { %v259_v9 = vsel %vm169_vm2, %v257_v7, 0.0 }
 0x3c2   :  { %v260_v10 = vrot.slane %v259_v9, 4  ;;  %v255_v11 = vpop.permute.xlu0 %254 }
 0x3c3   :  { %v258_v14 = vmul.f32 %v255_v11, %v837_v24  ;;  %v535_v15 = vrot.slane %v255_v11, %v530_v5  ;;  %v49_v24 = vld [vmem:[%s949_s6 + $0x8] sm:$0xff] }
 0x3c4   :  { %v261_v16 = vadd.f32 %v260_v10, %v259_v9  ;;  %v647_v31 = vpack.c.bf16 %v49_v24, %v48_v27 }
 0x3c5   :  { %v266_v17 = vsel %vm169_vm2, %v258_v14, 0.0  ;;  %v872_v19 = vsel %vm188_vm3, %v535_v15, %v531_v12 }
 0x3c6   :  { %v262_v20 = vrot.slane %v261_v16, 2  ;;  %v267_v22 = vrot.slane %v266_v17, 4 }
 0x3c7   :  { %v285_v43 = vpop.permute.xlu0 %284 }
 0x3c8   :  { %v263_v23 = vadd.f32 %v262_v20, %v261_v16  ;;  %v268_v13 = vadd.f32 %v267_v22, %v266_v17 }
 0x3ca   :  { %v269_v25 = vrot.slane %v268_v13, 2  ;;  %v264_v21 = vrot.slane %v263_v23, 1 }
 0x3cc   :  { %v270_v26 = vadd.f32 %v269_v25, %v268_v13  ;;  %v265_v29 = vadd.f32 %v264_v21, %v263_v23 }
 0x3ce   :  { %v271_v28 = vrot.slane %v270_v26, 1 }
 0x3d0   :  { %v272_v30 = vadd.f32 %v271_v28, %v270_v26 }
 0x3d2   :  { %v295_v34 = vsel %vm188_vm3, %v272_v30, %v265_v29 }
 0x3d3   :  { %613 = vmatmul.mubr.msk.f32.vlgmr.msra.gmra.mrb[0].mxu1 %vm169_vm2, %v295_v34 }
 0x3d4   :  { %648 = vmatpush3.bf16.msra.mxu1 %v647_v31  ;;  %623 = vmatprep.mubr.msk.f32.mxu1 %vm726_vm0, %v727_v6  ;;  %v56_v6 = vld [vmem:[%s951_s8 + $0x18] sm:$0xff] }
 0x3d5   :  { %649 = vmatprep.subr.bf16.mxu1 %v725_v3  ;;  %v656_v41 = vpack.c.bf16 %v56_v6, %v55_v38  ;;  %v576_v3 = vld [vmem:[%s950_s7] ss:$0 sm:$0xff] }
 0x3d7   :  { %657 = vmatpush3.bf16.msra.mxu0 %v656_v41 }
 0x3d8   :  { %651 = vmatpush3.bf16.msra.mxu1 %v650_v35 }
 0x3db   :  { %624 = vmatmul.mubr.msk.f32.vlgmr.msra.gmra.mrb[2].mxu1 %vm60_vm1, %v815_v8  ;;  %v45_v8 = vld [vmem:[%s947_s4] sm:$0x3]  ;;  %s731_s4 = smov [#allocation4]  }
 0x3dc   :  { %v290_v42 = vrot.slane %v45_v8, %v848_v39  ;;  %v281_v44 = vrot.slane %v45_v8, %v826_v18  ;;  %s561_s2 = sshll.u32 %s731_s4, 4  ;;  %s562_s2 = int_to_ptr.vmem [resolvable:$true] %s561_s2 }
 0x3dd   :  { %s677_s29 = scalar_lea.vmem %s562_s2, 32  ;;  %p682_p1 = scmp.lt.s32.totalorder %s562_s2, %s562_s2 }
 0x3de   :  { %v291_v47 = vmul.f32 %v290_v42, %v285_v43  ;;  %v282_v49 = vmul.f32 %v281_v44, %v276_v45  ;;  %p678_p0 = scmp.ne.s32.totalorder %s562_s2, %s677_s29  ;;  %p683_p2 = scmp.lt.s32.totalorder %s677_s29, %s677_s29 }
 0x3e0   :  { %v292_v50 = vadd.f32 %v291_v47, %v282_v49  ;;  %p684_p3 = por %p683_p2, %p682_p1 }
 0x3e2   :  { %p685_p4 = pnand %p684_p3, %p678_p0 }
 0x4a6   :  { %v364_v46 = vpop.f32.mrb[0].mxu1 }
 0x4a7   :  { %v614_v48 = vpop.f32.mrb[1].mxu1  ;;  %v368_v51 = vadd.f32 %v364_v46, %v292_v50 }
 0x4ae   :  { %v435_v52 = vpop.f32.mrb[2].mxu1 }
 0x4af   :  { %v439_v53 = vadd.f32 %v435_v52, %v368_v51  ;;  %v625_v54 = vpop.f32.mrb[3].mxu1 }
 0x4b1   :  { %v446_v55 = vadd.f32 %v576_v3, %v439_v53 }
 0x4b3   :  { %675 = vtanh.f32 %v446_v55 }
 0x4bd   :  { %v676_v39 = vpop.eup %675 }
 0x4be   :  { %635 = vmatmul.mubr.msk.f32.vlgmr.msra.gmra.mrb[2].mxu0 %vm60_vm1, %v676_v39  ;;  %544 = vst.msk [vmem:[#allocation4] sm:$0x3] %vm543_vm5, %v676_v39 }
 0x4bf   :  { %688 = shalt.err (!%p685_p4)
}
 0x4c0   :  { %s689_s12 = scalar_lea.hbm %s954_s11, 32 }
 0x4c1   :  { %p690_p5 = scmp.ne.s32.totalorder %s954_s11, %s689_s12  ;;  %p693_p6 = scmp.lt.u32.totalorder %s689_s12, %s954_s11 }
 0x4c3   :  { %p695_p7 = pnand %p693_p6, %p690_p5 }
 0x4c5   :  { %698 = shalt.err (!%p695_p7)
}
 0x4c6   :  { %564 = dma.vmem_to_hbm [thread:$0]  %s562_s2, 32, %s954_s11, [#allocation5]   ;;  %v577_v18 = vld [vmem:[%s952_s9] ss:$0 sm:$0xff]  ;;  %vm538_vm6 = vcmask 15360   ;;  %vm540_vm7 = vcmask 80896  }
 0x4c7   :  { %s732_s19 = smov [#allocation2]  }
 0x4c8   :  { %s551_s20 = sshll.u32 %s732_s19, 4  ;;  %s552_s20 = int_to_ptr.vmem [resolvable:$true] %s551_s20 }
 0x4c9   :  { %s699_s21 = scalar_lea.vmem %s552_s20, 32  ;;  %p704_p9 = scmp.lt.s32.totalorder %s552_s20, %s552_s20 }
 0x4ca   :  { %p700_p8 = scmp.ne.s32.totalorder %s552_s20, %s699_s21  ;;  %p705_p10 = scmp.lt.s32.totalorder %s699_s21, %s699_s21 }
 0x4cc   :  { %p706_p11 = por %p705_p10, %p704_p9 }
 0x4ce   :  { %p707_p12 = pnand %p706_p11, %p700_p8 }
 0x591   :  { %v523_v56 = vpop.f32.mrb[2].mxu0 }
 0x592   :  { %v524_v57 = vadd.f32 %v577_v18, %v523_v56  ;;  %v636_v58 = vpop.f32.mrb[3].mxu0 }
 0x594   :  { %v539_v59 = vsel %vm538_vm6, %v524_v57, %v872_v19 }
 0x595   :  { %v541_v60 = vsel %vm540_vm7, %v539_v59, 0.0 }
 0x596   :  { %542 = vst [vmem:[#allocation2] sm:$0x3] %v541_v60 }
 0x597   :  { %710 = shalt.err (!%p707_p12)
}
 0x598   :  { %s711_s22 = scalar_lea.hbm %s953_s10, 32 }
 0x599   :  { %p712_p13 = scmp.ne.s32.totalorder %s953_s10, %s711_s22  ;;  %p715_p0 = scmp.lt.u32.totalorder %s711_s22, %s953_s10 }
 0x59b   :  { %p717_p1 = pnand %p715_p0, %p712_p13 }
 0x59d   :  { %720 = shalt.err (!%p717_p1)
}
 0x59e   :  { %554 = dma.vmem_to_hbm [thread:$0]  %s552_s20, 32, %s953_s10, [#allocation3]  }
 0x59f   :  { %721 = dma.done.wait [#allocation3], 32  }
 0x5a0   :  { %722 = vsyncadd [#allocation3], 4294967264 }
 0x5a1   :  { %723 = dma.done.wait [#allocation5], 32  }
 0x5a2   :  { %724 = vsyncadd [#allocation5], 4294967264 }
 0x5a3   :  { %571 = vsyncpa [#allocation3], 1 }
 0x5a4   :  { %572 = vsyncpa [#allocation5], 1 }

</bundles_post_ra>
